<compile_context>
chip_gen: v7x
topology: tpu7x:2x2x1
jax: 0.10.0
libtpu: 0.0.40
codegen_flags: <defaults>
</compile_context>

<pallas_src>
import functools
import numpy as np
import jax
import jax.numpy as jnp
from jax.experimental import pallas as pl
from jax.experimental.pallas import tpu as pltpu


_SELECT_MAX_V = 8                        # vocab size up to which the VPU select gather is used
_VMEM_BUDGET = 24 * 1024 * 1024          # conservative: fits v7x (64 MiB VMEM total)


def _round_up(x, m):
    return -(-x // m) * m


def _bcast_cols(cols, seg, G):
    """Broadcast per-(folded-row, g) scalars across their lane segment.

    cols : list of G arrays, each (TILE, 1)
    seg  : (1, W) float32 constant holding the segment id (0..G-1) of every lane
    Returns (TILE, W); for G == 1 returns (TILE, 1) and relies on downstream
    broadcasting against (1, W) operands (exactly like the original kernel).
    Exact (no MXU involved), so float time/value keep full f32 precision.
    """
    if G == 1:
        return cols[0]
    out = jnp.where(seg == 0.0, cols[0], 0.0)
    for g in range(1, G):
        out = jnp.where(seg == float(g), cols[g], out)
    return out


def _time_value_terms(t_b, v_b, w_val, b_val, c1, c2, sinusoidal):
    # Start the accumulator from the value term (saves a zero-init + add pass).
    acc = jnp.tanh(v_b * w_val + b_val)
    pre = t_b * c1 + c2
    acc = acc + (jnp.sin(pre) if sinusoidal else jnp.tanh(pre))
    return acc


def _embedding_kernel_select(packed_ref, segd_ref, w_val_ref, b_val_ref,
                             c1_ref, c2_ref, tab_ref, out_ref,
                             *, G, sinusoidal):
    """Small-vocabulary path (V <= 8): exact V-way select-accumulate."""
    V = tab_ref.shape[0]
    seg_d = segd_ref[...]                                       # (1, G*D)

    t_cols = [packed_ref[:, g:g + 1] for g in range(G)]
    v_cols = [packed_ref[:, G + g:G + g + 1] for g in range(G)]
    r_cols = [packed_ref[:, 2 * G + g:2 * G + g + 1] for g in range(G)]

    acc = _time_value_terms(_bcast_cols(t_cols, seg_d, G),
                            _bcast_cols(v_cols, seg_d, G),
                            w_val_ref[...], b_val_ref[...],
                            c1_ref[...], c2_ref[...], sinusoidal)

    var_b = _bcast_cols(r_cols, seg_d, G)                       # (TILE, G*D) or (TILE, 1)
    tab = tab_ref[...]                                          # (V, G*D), resident
    for v in range(V):                                          # static, V <= 8
        acc = acc + jnp.where(var_b == float(v), tab[v:v + 1, :], 0.0)

    out_ref[...] = acc.astype(out_ref.dtype)


def _embedding_kernel_onehot(packed_ref, segd_ref, segv_ref, vidx_ref,
                             w_val_ref, b_val_ref, c1_ref, c2_ref,
                             wfold_ref, out_ref, *, G, sinusoidal):
    """Moderate-vocabulary path: one-hot gather on the (otherwise idle) MXU."""
    seg_d = segd_ref[...]                                       # (1, G*D)
    seg_v = segv_ref[...]                                       # (1, G*V)

    t_cols = [packed_ref[:, g:g + 1] for g in range(G)]
    v_cols = [packed_ref[:, G + g:G + g + 1] for g in range(G)]
    r_cols = [packed_ref[:, 2 * G + g:2 * G + g + 1] for g in range(G)]

    # One-hot over (segment, vocab) lanes; compare on exactly-cast integers.
    var_vg = _bcast_cols(r_cols, seg_v, G)                      # (TILE, G*V) or (TILE, 1)
    onehot = (var_vg == vidx_ref[...]).astype(jnp.float32)      # (TILE, G*V)
    acc = jnp.dot(onehot, wfold_ref[...],
                  preferred_element_type=jnp.float32)           # (TILE, G*D)

    acc = acc + _time_value_terms(_bcast_cols(t_cols, seg_d, G),
                                  _bcast_cols(v_cols, seg_d, G),
                                  w_val_ref[...], b_val_ref[...],
                                  c1_ref[...], c2_ref[...], sinusoidal)

    out_ref[...] = acc.astype(out_ref.dtype)


def _embedding_forward_impl(time, variable, value, params, *, sinusoidal=True,
                            max_tile_rows=1024, out_dtype=jnp.float32):
    """time/variable/value: [B, S]; returns [B, S, D]."""
    B, S = time.shape
    V, D = params["table"].shape
    N = B * S

    # Lane-folding factor: fold G consecutive rows into the 128-lane width.
    G = 128 // D if (D < 128 and 128 % D == 0) else 1
    GD = G * D

    n_fold = -(-N // G)
    use_onehot = V > _SELECT_MAX_V
    table_bytes = (G * V if use_onehot else V) * GD * 4

    # Row-tile sizing: multiple of 8 folded rows, >= ~4 grid steps when there
    # is enough work (v7x has 2 TensorCores), capped by the VMEM budget.
    per_row_bytes = 2 * GD * 4 + 2 * 128 * 4        # out + packed, double-buffered
    cap = max(8, ((_VMEM_BUDGET - table_bytes) // per_row_bytes) // 8 * 8)
    want = max(8, _round_up(-(-n_fold // 4), 8))
    tile_f = int(min(max_tile_rows, cap, want))
    n_fold_pad = _round_up(max(n_fold, tile_f), tile_f)
    n_rows_pad = n_fold_pad * G

    def fold(x):
        x = x.reshape(-1).astype(jnp.float32)
        x = jnp.pad(x, (0, n_rows_pad - N))
        return x.reshape(n_fold_pad, G)

    # One packed, lane-major scalar stream: [time | value | variable], f32.
    packed = jnp.concatenate([fold(time), fold(value), fold(variable)], axis=1)

    # Grid-invariant (1, G*D) constants, tiled across the folded lane segments.
    if sinusoidal:
        assert D % 2 == 0, "sinusoidal time embedding needs an even d_model"
        j = np.arange(D)
        parity = j % 2
        freq = np.exp(-(np.log(10000.0) / D) * (j - parity))
        phase = parity * (np.pi / 2.0)              # sin(x + pi/2) == cos(x)
        c1 = jnp.asarray(np.tile(freq, G)[None, :], jnp.float32)
        c2 = jnp.asarray(np.tile(phase, G)[None, :], jnp.float32)
    else:
        assert params["w_time"].shape == (1, D) and params["b_time"].shape == (1, D)
        c1 = jnp.tile(params["w_time"].astype(jnp.float32), (1, G))
        c2 = jnp.tile(params["b_time"].astype(jnp.float32), (1, G))
    w_val_f = jnp.tile(params["w_val"].astype(jnp.float32), (1, G))
    b_val_f = jnp.tile(params["b_val"].astype(jnp.float32), (1, G))
    seg_d = jnp.asarray(np.repeat(np.arange(G, dtype=np.float32), D)[None, :])

    row_spec = pl.BlockSpec((tile_f, 3 * G), lambda i: (i, 0))
    cgd_spec = pl.BlockSpec((1, GD), lambda i: (0, 0))
    out_spec = pl.BlockSpec((tile_f, GD), lambda i: (i, 0))

    table = params["table"].astype(jnp.float32)
    if not use_onehot:
        tab_fold = jnp.tile(table, (1, G))                       # (V, G*D)
        kernel = functools.partial(_embedding_kernel_select, G=G,
                                   sinusoidal=sinusoidal)
        inputs = (packed, seg_d, w_val_f, b_val_f, c1, c2, tab_fold)
        in_specs = [row_spec, cgd_spec, cgd_spec, cgd_spec, cgd_spec, cgd_spec,
                    pl.BlockSpec((V, GD), lambda i: (0, 0))]
    else:
        # TODO(synk): for very large vocabularies (table >> VMEM, e.g. 32k x 512)
        # switch to a scalar-prefetch / DMA row gather instead of keeping the
        # folded table resident; this path assumes the folded table fits VMEM.
        GV = G * V
        seg_v = jnp.asarray(np.repeat(np.arange(G, dtype=np.float32), V)[None, :])
        vidx = jnp.asarray(np.tile(np.arange(V, dtype=np.float32), G)[None, :])
        eye_g = jnp.asarray(np.eye(G, dtype=np.float32))
        # Block-diagonal folded table: wfold[g*V+v, g*D+d] = table[v, d].
        wfold = jnp.einsum("gh,vd->gvhd", eye_g, table).reshape(GV, GD)
        kernel = functools.partial(_embedding_kernel_onehot, G=G,
                                   sinusoidal=sinusoidal)
        inputs = (packed, seg_d, seg_v, vidx, w_val_f, b_val_f, c1, c2, wfold)
        cgv_spec = pl.BlockSpec((1, GV), lambda i: (0, 0))
        in_specs = [row_spec, cgd_spec, cgv_spec, cgv_spec, cgd_spec, cgd_spec,
                    cgd_spec, cgd_spec, pl.BlockSpec((GV, GD), lambda i: (0, 0))]

    out = pl.pallas_call(
        kernel,
        out_shape=jax.ShapeDtypeStruct((n_fold_pad, GD), out_dtype),
        grid=(n_fold_pad // tile_f,),
        in_specs=in_specs,
        out_specs=out_spec,
        compiler_params=pltpu.CompilerParams(
            dimension_semantics=("parallel",),
            vmem_limit_bytes=32 * 1024 * 1024),
    )(*inputs)

    # Unfold lanes back to rows and strip padding.
    return out.reshape(n_fold_pad * G, D)[:N].reshape(B, S, D)


# jit so padding/packing/constants and the final slice fuse with the call.
embedding_forward = jax.jit(
    _embedding_forward_impl,
    static_argnames=("sinusoidal", "max_tile_rows", "out_dtype"))


def _reference(time, variable, value, params, *, sinusoidal=True):
    """Plain-JAX reference mirroring the PyTorch module."""
    D = params["table"].shape[1]
    val_emb = jnp.tanh(value[..., None] * params["w_val"][0] + params["b_val"][0])
    if sinusoidal:
        div = jnp.exp(jnp.arange(0, D, 2, dtype=jnp.float32) * -(np.log(10000.0) / D))
        s = jnp.sin(time[..., None] * div)
        c = jnp.cos(time[..., None] * div)
        time_emb = jnp.stack([s, c], axis=-1).reshape(*time.shape, D)
    else:
        time_emb = jnp.tanh(time[..., None] * params["w_time"][0] + params["b_time"][0])
    var_emb = params["table"][variable]
    return time_emb + val_emb + var_emb


if __name__ == "__main__":
    def run_case(B, S, D, num_variables, sinusoidal, case_id, bf16_table=False):
        V = num_variables + 1
        key = jax.random.fold_in(jax.random.PRNGKey(0), case_id)
        ks = jax.random.split(key, 8)
        time = jax.random.uniform(ks[0], (B, S), jnp.float32, 0.0, 48.0)   # "hours"
        value = jax.random.normal(ks[1], (B, S), jnp.float32)
        variable = jax.random.randint(ks[2], (B, S), 0, V, jnp.int32)
        params = {
            "w_val": 0.1 * jax.random.normal(ks[3], (1, D), jnp.float32),
            "b_val": 0.1 * jax.random.normal(ks[4], (1, D), jnp.float32),
            "w_time": 0.1 * jax.random.normal(ks[5], (1, D), jnp.float32),
            "b_time": 0.1 * jax.random.normal(ks[6], (1, D), jnp.float32),
            "table": 0.1 * jax.random.normal(ks[7], (V, D), jnp.float32),
        }
        if bf16_table:
            # Keep the check independent of how the MXU decomposes f32 matmuls.
            params["table"] = params["table"].astype(jnp.bfloat16).astype(jnp.float32)
        out = jax.block_until_ready(
            embedding_forward(time, variable, value, params, sinusoidal=sinusoidal))
        assert out.shape == (B, S, D), out.shape
        ref = _reference(time, variable, value, params, sinusoidal=sinusoidal)
        np.testing.assert_allclose(np.asarray(out), np.asarray(ref),
                                   rtol=1e-5, atol=1e-5)

    # Shipped config: D=32 (lane-folded, G=4), small vocab -> select gather.
    run_case(2, 8, 32, 5, True, 0)
    # Linear + tanh time-embedding path.
    run_case(2, 8, 32, 5, False, 1)
    # Moderate vocab -> one-hot MXU gather, multi-step grid.
    run_case(4, 256, 32, 31, True, 2, bf16_table=True)
    # D >= 128 -> no lane folding (G = 1).
    run_case(2, 8, 128, 5, True, 3)

    print("KERNEL_OK")
</pallas_src>

<mosaic_0001>
module attributes {stable_mosaic.version = 11 : i64} {
  func.func @_embedding_kernel_select(%arg0: i32, %arg1: memref<8x12xf32, #tpu.memory_space<vmem>>, %arg2: memref<1x128xf32, #tpu.memory_space<vmem>>, %arg3: memref<1x128xf32, #tpu.memory_space<vmem>>, %arg4: memref<1x128xf32, #tpu.memory_space<vmem>>, %arg5: memref<1x128xf32, #tpu.memory_space<vmem>>, %arg6: memref<1x128xf32, #tpu.memory_space<vmem>>, %arg7: memref<6x128xf32, #tpu.memory_space<vmem>>, %arg8: memref<8x128xf32, #tpu.memory_space<vmem>>) attributes {dimension_semantics = [#tpu.dimension_semantics<parallel>], iteration_bounds = array<i64: 1>, scalar_prefetch = 0 : i64, scratch_operands = 0 : i64, tpu.core_type = #tpu.core_type<tc>, window_params = [{transform_indices = @transform_0, window_bounds = array<i64: 8, 12>}, {pipeline_mode = #tpu.pipeline_mode<synchronous>, transform_indices = @transform_1, window_bounds = array<i64: 1, 128>}, {pipeline_mode = #tpu.pipeline_mode<synchronous>, transform_indices = @transform_2, window_bounds = array<i64: 1, 128>}, {pipeline_mode = #tpu.pipeline_mode<synchronous>, transform_indices = @transform_3, window_bounds = array<i64: 1, 128>}, {pipeline_mode = #tpu.pipeline_mode<synchronous>, transform_indices = @transform_4, window_bounds = array<i64: 1, 128>}, {pipeline_mode = #tpu.pipeline_mode<synchronous>, transform_indices = @transform_5, window_bounds = array<i64: 1, 128>}, {pipeline_mode = #tpu.pipeline_mode<synchronous>, transform_indices = @transform_6, window_bounds = array<i64: 6, 128>}, {transform_indices = @transform_7, window_bounds = array<i64: 8, 128>}]} {
    %c0 = arith.constant 0 : index
    %c0_0 = arith.constant 0 : index
    %0 = vector.load %arg2[%c0, %c0_0] : memref<1x128xf32, #tpu.memory_space<vmem>>, vector<1x128xf32>
    %c0_1 = arith.constant 0 : index
    %c0_2 = arith.constant 0 : index
    %1 = vector.load %arg1[%c0_1, %c0_2] : memref<8x12xf32, #tpu.memory_space<vmem>>, vector<8x1xf32>
    %c0_3 = arith.constant 0 : index
    %c1 = arith.constant 1 : index
    %2 = vector.load %arg1[%c0_3, %c1] : memref<8x12xf32, #tpu.memory_space<vmem>>, vector<8x1xf32>
    %c0_4 = arith.constant 0 : index
    %c2 = arith.constant 2 : index
    %3 = vector.load %arg1[%c0_4, %c2] : memref<8x12xf32, #tpu.memory_space<vmem>>, vector<8x1xf32>
    %c0_5 = arith.constant 0 : index
    %c3 = arith.constant 3 : index
    %4 = vector.load %arg1[%c0_5, %c3] : memref<8x12xf32, #tpu.memory_space<vmem>>, vector<8x1xf32>
    %c0_6 = arith.constant 0 : index
    %c4 = arith.constant 4 : index
    %5 = vector.load %arg1[%c0_6, %c4] : memref<8x12xf32, #tpu.memory_space<vmem>>, vector<8x1xf32>
    %c0_7 = arith.constant 0 : index
    %c5 = arith.constant 5 : index
    %6 = vector.load %arg1[%c0_7, %c5] : memref<8x12xf32, #tpu.memory_space<vmem>>, vector<8x1xf32>
    %c0_8 = arith.constant 0 : index
    %c6 = arith.constant 6 : index
    %7 = vector.load %arg1[%c0_8, %c6] : memref<8x12xf32, #tpu.memory_space<vmem>>, vector<8x1xf32>
    %c0_9 = arith.constant 0 : index
    %c7 = arith.constant 7 : index
    %8 = vector.load %arg1[%c0_9, %c7] : memref<8x12xf32, #tpu.memory_space<vmem>>, vector<8x1xf32>
    %c0_10 = arith.constant 0 : index
    %c8 = arith.constant 8 : index
    %9 = vector.load %arg1[%c0_10, %c8] : memref<8x12xf32, #tpu.memory_space<vmem>>, vector<8x1xf32>
    %c0_11 = arith.constant 0 : index
    %c9 = arith.constant 9 : index
    %10 = vector.load %arg1[%c0_11, %c9] : memref<8x12xf32, #tpu.memory_space<vmem>>, vector<8x1xf32>
    %c0_12 = arith.constant 0 : index
    %c10 = arith.constant 10 : index
    %11 = vector.load %arg1[%c0_12, %c10] : memref<8x12xf32, #tpu.memory_space<vmem>>, vector<8x1xf32>
    %c0_13 = arith.constant 0 : index
    %c11 = arith.constant 11 : index
    %12 = vector.load %arg1[%c0_13, %c11] : memref<8x12xf32, #tpu.memory_space<vmem>>, vector<8x1xf32>
    %cst = arith.constant 0.000000e+00 : f32
    %13 = vector.broadcast %cst : f32 to vector<1x128xf32>
    %14 = arith.cmpf oeq, %0, %13 : vector<1x128xf32>
    %cst_14 = arith.constant 0.000000e+00 : f32
    %15 = vector.shape_cast %14 : vector<1x128xi1> to vector<1x128xi1>
    %16 = vector.broadcast %15 : vector<1x128xi1> to vector<8x128xi1>
    %17 = vector.shape_cast %1 : vector<8x1xf32> to vector<8x1xf32>
    %18 = vector.broadcast %17 : vector<8x1xf32> to vector<8x128xf32>
    %19 = vector.broadcast %cst_14 : f32 to vector<8x128xf32>
    %20 = arith.select %16, %18, %19 : vector<8x128xi1>, vector<8x128xf32>
    %cst_15 = arith.constant 1.000000e+00 : f32
    %21 = vector.broadcast %cst_15 : f32 to vector<1x128xf32>
    %22 = arith.cmpf oeq, %0, %21 : vector<1x128xf32>
    %23 = vector.shape_cast %22 : vector<1x128xi1> to vector<1x128xi1>
    %24 = vector.broadcast %23 : vector<1x128xi1> to vector<8x128xi1>
    %25 = vector.shape_cast %2 : vector<8x1xf32> to vector<8x1xf32>
    %26 = vector.broadcast %25 : vector<8x1xf32> to vector<8x128xf32>
    %27 = arith.select %24, %26, %20 : vector<8x128xi1>, vector<8x128xf32>
    %cst_16 = arith.constant 2.000000e+00 : f32
    %28 = vector.broadcast %cst_16 : f32 to vector<1x128xf32>
    %29 = arith.cmpf oeq, %0, %28 : vector<1x128xf32>
    %30 = vector.shape_cast %29 : vector<1x128xi1> to vector<1x128xi1>
    %31 = vector.broadcast %30 : vector<1x128xi1> to vector<8x128xi1>
    %32 = vector.shape_cast %3 : vector<8x1xf32> to vector<8x1xf32>
    %33 = vector.broadcast %32 : vector<8x1xf32> to vector<8x128xf32>
    %34 = arith.select %31, %33, %27 : vector<8x128xi1>, vector<8x128xf32>
    %cst_17 = arith.constant 3.000000e+00 : f32
    %35 = vector.broadcast %cst_17 : f32 to vector<1x128xf32>
    %36 = arith.cmpf oeq, %0, %35 : vector<1x128xf32>
    %37 = vector.shape_cast %36 : vector<1x128xi1> to vector<1x128xi1>
    %38 = vector.broadcast %37 : vector<1x128xi1> to vector<8x128xi1>
    %39 = vector.shape_cast %4 : vector<8x1xf32> to vector<8x1xf32>
    %40 = vector.broadcast %39 : vector<8x1xf32> to vector<8x128xf32>
    %41 = arith.select %38, %40, %34 : vector<8x128xi1>, vector<8x128xf32>
    %cst_18 = arith.constant 0.000000e+00 : f32
    %42 = vector.broadcast %cst_18 : f32 to vector<1x128xf32>
    %43 = arith.cmpf oeq, %0, %42 : vector<1x128xf32>
    %cst_19 = arith.constant 0.000000e+00 : f32
    %44 = vector.shape_cast %43 : vector<1x128xi1> to vector<1x128xi1>
    %45 = vector.broadcast %44 : vector<1x128xi1> to vector<8x128xi1>
    %46 = vector.shape_cast %5 : vector<8x1xf32> to vector<8x1xf32>
    %47 = vector.broadcast %46 : vector<8x1xf32> to vector<8x128xf32>
    %48 = vector.broadcast %cst_19 : f32 to vector<8x128xf32>
    %49 = arith.select %45, %47, %48 : vector<8x128xi1>, vector<8x128xf32>
    %cst_20 = arith.constant 1.000000e+00 : f32
    %50 = vector.broadcast %cst_20 : f32 to vector<1x128xf32>
    %51 = arith.cmpf oeq, %0, %50 : vector<1x128xf32>
    %52 = vector.shape_cast %51 : vector<1x128xi1> to vector<1x128xi1>
    %53 = vector.broadcast %52 : vector<1x128xi1> to vector<8x128xi1>
    %54 = vector.shape_cast %6 : vector<8x1xf32> to vector<8x1xf32>
    %55 = vector.broadcast %54 : vector<8x1xf32> to vector<8x128xf32>
    %56 = arith.select %53, %55, %49 : vector<8x128xi1>, vector<8x128xf32>
    %cst_21 = arith.constant 2.000000e+00 : f32
    %57 = vector.broadcast %cst_21 : f32 to vector<1x128xf32>
    %58 = arith.cmpf oeq, %0, %57 : vector<1x128xf32>
    %59 = vector.shape_cast %58 : vector<1x128xi1> to vector<1x128xi1>
    %60 = vector.broadcast %59 : vector<1x128xi1> to vector<8x128xi1>
    %61 = vector.shape_cast %7 : vector<8x1xf32> to vector<8x1xf32>
    %62 = vector.broadcast %61 : vector<8x1xf32> to vector<8x128xf32>
    %63 = arith.select %60, %62, %56 : vector<8x128xi1>, vector<8x128xf32>
    %cst_22 = arith.constant 3.000000e+00 : f32
    %64 = vector.broadcast %cst_22 : f32 to vector<1x128xf32>
    %65 = arith.cmpf oeq, %0, %64 : vector<1x128xf32>
    %66 = vector.shape_cast %65 : vector<1x128xi1> to vector<1x128xi1>
    %67 = vector.broadcast %66 : vector<1x128xi1> to vector<8x128xi1>
    %68 = vector.shape_cast %8 : vector<8x1xf32> to vector<8x1xf32>
    %69 = vector.broadcast %68 : vector<8x1xf32> to vector<8x128xf32>
    %70 = arith.select %67, %69, %63 : vector<8x128xi1>, vector<8x128xf32>
    %c0_23 = arith.constant 0 : index
    %c0_24 = arith.constant 0 : index
    %71 = vector.load %arg3[%c0_23, %c0_24] : memref<1x128xf32, #tpu.memory_space<vmem>>, vector<1x128xf32>
    %c0_25 = arith.constant 0 : index
    %c0_26 = arith.constant 0 : index
    %72 = vector.load %arg4[%c0_25, %c0_26] : memref<1x128xf32, #tpu.memory_space<vmem>>, vector<1x128xf32>
    %c0_27 = arith.constant 0 : index
    %c0_28 = arith.constant 0 : index
    %73 = vector.load %arg5[%c0_27, %c0_28] : memref<1x128xf32, #tpu.memory_space<vmem>>, vector<1x128xf32>
    %c0_29 = arith.constant 0 : index
    %c0_30 = arith.constant 0 : index
    %74 = vector.load %arg6[%c0_29, %c0_30] : memref<1x128xf32, #tpu.memory_space<vmem>>, vector<1x128xf32>
    %75 = vector.broadcast %71 : vector<1x128xf32> to vector<8x128xf32>
    %76 = arith.mulf %70, %75 : vector<8x128xf32>
    %77 = vector.broadcast %72 : vector<1x128xf32> to vector<8x128xf32>
    %78 = arith.addf %76, %77 : vector<8x128xf32>
    %79 = math.tanh %78 : vector<8x128xf32>
    %80 = vector.broadcast %73 : vector<1x128xf32> to vector<8x128xf32>
    %81 = arith.mulf %41, %80 : vector<8x128xf32>
    %82 = vector.broadcast %74 : vector<1x128xf32> to vector<8x128xf32>
    %83 = arith.addf %81, %82 : vector<8x128xf32>
    %84 = math.sin %83 : vector<8x128xf32>
    %85 = arith.addf %79, %84 : vector<8x128xf32>
    %cst_31 = arith.constant 0.000000e+00 : f32
    %86 = vector.broadcast %cst_31 : f32 to vector<1x128xf32>
    %87 = arith.cmpf oeq, %0, %86 : vector<1x128xf32>
    %cst_32 = arith.constant 0.000000e+00 : f32
    %88 = vector.shape_cast %87 : vector<1x128xi1> to vector<1x128xi1>
    %89 = vector.broadcast %88 : vector<1x128xi1> to vector<8x128xi1>
    %90 = vector.shape_cast %9 : vector<8x1xf32> to vector<8x1xf32>
    %91 = vector.broadcast %90 : vector<8x1xf32> to vector<8x128xf32>
    %92 = vector.broadcast %cst_32 : f32 to vector<8x128xf32>
    %93 = arith.select %89, %91, %92 : vector<8x128xi1>, vector<8x128xf32>
    %cst_33 = arith.constant 1.000000e+00 : f32
    %94 = vector.broadcast %cst_33 : f32 to vector<1x128xf32>
    %95 = arith.cmpf oeq, %0, %94 : vector<1x128xf32>
    %96 = vector.shape_cast %95 : vector<1x128xi1> to vector<1x128xi1>
    %97 = vector.broadcast %96 : vector<1x128xi1> to vector<8x128xi1>
    %98 = vector.shape_cast %10 : vector<8x1xf32> to vector<8x1xf32>
    %99 = vector.broadcast %98 : vector<8x1xf32> to vector<8x128xf32>
    %100 = arith.select %97, %99, %93 : vector<8x128xi1>, vector<8x128xf32>
    %cst_34 = arith.constant 2.000000e+00 : f32
    %101 = vector.broadcast %cst_34 : f32 to vector<1x128xf32>
    %102 = arith.cmpf oeq, %0, %101 : vector<1x128xf32>
    %103 = vector.shape_cast %102 : vector<1x128xi1> to vector<1x128xi1>
    %104 = vector.broadcast %103 : vector<1x128xi1> to vector<8x128xi1>
    %105 = vector.shape_cast %11 : vector<8x1xf32> to vector<8x1xf32>
    %106 = vector.broadcast %105 : vector<8x1xf32> to vector<8x128xf32>
    %107 = arith.select %104, %106, %100 : vector<8x128xi1>, vector<8x128xf32>
    %cst_35 = arith.constant 3.000000e+00 : f32
    %108 = vector.broadcast %cst_35 : f32 to vector<1x128xf32>
    %109 = arith.cmpf oeq, %0, %108 : vector<1x128xf32>
    %110 = vector.shape_cast %109 : vector<1x128xi1> to vector<1x128xi1>
    %111 = vector.broadcast %110 : vector<1x128xi1> to vector<8x128xi1>
    %112 = vector.shape_cast %12 : vector<8x1xf32> to vector<8x1xf32>
    %113 = vector.broadcast %112 : vector<8x1xf32> to vector<8x128xf32>
    %114 = arith.select %111, %113, %107 : vector<8x128xi1>, vector<8x128xf32>
    %c0_36 = arith.constant 0 : index
    %c0_37 = arith.constant 0 : index
    %115 = vector.load %arg7[%c0_36, %c0_37] : memref<6x128xf32, #tpu.memory_space<vmem>>, vector<6x128xf32>
    %cst_38 = arith.constant 0.000000e+00 : f32
    %116 = vector.broadcast %cst_38 : f32 to vector<8x128xf32>
    %117 = arith.cmpf oeq, %114, %116 : vector<8x128xf32>
    %118 = vector.extract_strided_slice %115 {offsets = [0, 0], sizes = [1, 128], strides = [1, 1]} : vector<6x128xf32> to vector<1x128xf32>
    %cst_39 = arith.constant 0.000000e+00 : f32
    %119 = vector.shape_cast %118 : vector<1x128xf32> to vector<1x128xf32>
    %120 = vector.broadcast %119 : vector<1x128xf32> to vector<8x128xf32>
    %121 = vector.broadcast %cst_39 : f32 to vector<8x128xf32>
    %122 = arith.select %117, %120, %121 : vector<8x128xi1>, vector<8x128xf32>
    %123 = arith.addf %85, %122 : vector<8x128xf32>
    %cst_40 = arith.constant 1.000000e+00 : f32
    %124 = vector.broadcast %cst_40 : f32 to vector<8x128xf32>
    %125 = arith.cmpf oeq, %114, %124 : vector<8x128xf32>
    %126 = vector.extract_strided_slice %115 {offsets = [1, 0], sizes = [1, 128], strides = [1, 1]} : vector<6x128xf32> to vector<1x128xf32>
    %cst_41 = arith.constant 0.000000e+00 : f32
    %127 = vector.shape_cast %126 : vector<1x128xf32> to vector<1x128xf32>
    %128 = vector.broadcast %127 : vector<1x128xf32> to vector<8x128xf32>
    %129 = vector.broadcast %cst_41 : f32 to vector<8x128xf32>
    %130 = arith.select %125, %128, %129 : vector<8x128xi1>, vector<8x128xf32>
    %131 = arith.addf %123, %130 : vector<8x128xf32>
    %cst_42 = arith.constant 2.000000e+00 : f32
    %132 = vector.broadcast %cst_42 : f32 to vector<8x128xf32>
    %133 = arith.cmpf oeq, %114, %132 : vector<8x128xf32>
    %134 = vector.extract_strided_slice %115 {offsets = [2, 0], sizes = [1, 128], strides = [1, 1]} : vector<6x128xf32> to vector<1x128xf32>
    %cst_43 = arith.constant 0.000000e+00 : f32
    %135 = vector.shape_cast %134 : vector<1x128xf32> to vector<1x128xf32>
    %136 = vector.broadcast %135 : vector<1x128xf32> to vector<8x128xf32>
    %137 = vector.broadcast %cst_43 : f32 to vector<8x128xf32>
    %138 = arith.select %133, %136, %137 : vector<8x128xi1>, vector<8x128xf32>
    %139 = arith.addf %131, %138 : vector<8x128xf32>
    %cst_44 = arith.constant 3.000000e+00 : f32
    %140 = vector.broadcast %cst_44 : f32 to vector<8x128xf32>
    %141 = arith.cmpf oeq, %114, %140 : vector<8x128xf32>
    %142 = vector.extract_strided_slice %115 {offsets = [3, 0], sizes = [1, 128], strides = [1, 1]} : vector<6x128xf32> to vector<1x128xf32>
    %cst_45 = arith.constant 0.000000e+00 : f32
    %143 = vector.shape_cast %142 : vector<1x128xf32> to vector<1x128xf32>
    %144 = vector.broadcast %143 : vector<1x128xf32> to vector<8x128xf32>
    %145 = vector.broadcast %cst_45 : f32 to vector<8x128xf32>
    %146 = arith.select %141, %144, %145 : vector<8x128xi1>, vector<8x128xf32>
    %147 = arith.addf %139, %146 : vector<8x128xf32>
    %cst_46 = arith.constant 4.000000e+00 : f32
    %148 = vector.broadcast %cst_46 : f32 to vector<8x128xf32>
    %149 = arith.cmpf oeq, %114, %148 : vector<8x128xf32>
    %150 = vector.extract_strided_slice %115 {offsets = [4, 0], sizes = [1, 128], strides = [1, 1]} : vector<6x128xf32> to vector<1x128xf32>
    %cst_47 = arith.constant 0.000000e+00 : f32
    %151 = vector.shape_cast %150 : vector<1x128xf32> to vector<1x128xf32>
    %152 = vector.broadcast %151 : vector<1x128xf32> to vector<8x128xf32>
    %153 = vector.broadcast %cst_47 : f32 to vector<8x128xf32>
    %154 = arith.select %149, %152, %153 : vector<8x128xi1>, vector<8x128xf32>
    %155 = arith.addf %147, %154 : vector<8x128xf32>
    %cst_48 = arith.constant 5.000000e+00 : f32
    %156 = vector.broadcast %cst_48 : f32 to vector<8x128xf32>
    %157 = arith.cmpf oeq, %114, %156 : vector<8x128xf32>
    %158 = vector.extract_strided_slice %115 {offsets = [5, 0], sizes = [1, 128], strides = [1, 1]} : vector<6x128xf32> to vector<1x128xf32>
    %cst_49 = arith.constant 0.000000e+00 : f32
    %159 = vector.shape_cast %158 : vector<1x128xf32> to vector<1x128xf32>
    %160 = vector.broadcast %159 : vector<1x128xf32> to vector<8x128xf32>
    %161 = vector.broadcast %cst_49 : f32 to vector<8x128xf32>
    %162 = arith.select %157, %160, %161 : vector<8x128xi1>, vector<8x128xf32>
    %163 = arith.addf %155, %162 : vector<8x128xf32>
    %c0_50 = arith.constant 0 : index
    %c0_51 = arith.constant 0 : index
    %164 = vector.load %arg8[%c0_50, %c0_51] : memref<8x128xf32, #tpu.memory_space<vmem>>, vector<8x128xf32>
    tpu.vector_store %arg8[%c0_50, %c0_51], %163 {strides = array<i32>} : memref<8x128xf32, #tpu.memory_space<vmem>>, vector<8x128xf32>,
    return
  }
  func.func @transform_0(%arg0: i32) -> (i32, i32) {
    %c0_i32 = arith.constant 0 : i32
    %c0_i32_0 = arith.constant 0 : i32
    return %arg0, %c0_i32 : i32, i32
  }
  func.func @transform_1(%arg0: i32) -> (i32, i32) {
    %c0_i32 = arith.constant 0 : i32
    %c0_i32_0 = arith.constant 0 : i32
    %c0_i32_1 = arith.constant 0 : i32
    return %c0_i32, %c0_i32_0 : i32, i32
  }
  func.func @transform_2(%arg0: i32) -> (i32, i32) {
    %c0_i32 = arith.constant 0 : i32
    %c0_i32_0 = arith.constant 0 : i32
    %c0_i32_1 = arith.constant 0 : i32
    return %c0_i32, %c0_i32_0 : i32, i32
  }
  func.func @transform_3(%arg0: i32) -> (i32, i32) {
    %c0_i32 = arith.constant 0 : i32
    %c0_i32_0 = arith.constant 0 : i32
    %c0_i32_1 = arith.constant 0 : i32
    return %c0_i32, %c0_i32_0 : i32, i32
  }
  func.func @transform_4(%arg0: i32) -> (i32, i32) {
    %c0_i32 = arith.constant 0 : i32
    %c0_i32_0 = arith.constant 0 : i32
    %c0_i32_1 = arith.constant 0 : i32
    return %c0_i32, %c0_i32_0 : i32, i32
  }
  func.func @transform_5(%arg0: i32) -> (i32, i32) {
    %c0_i32 = arith.constant 0 : i32
    %c0_i32_0 = arith.constant 0 : i32
    %c0_i32_1 = arith.constant 0 : i32
    return %c0_i32, %c0_i32_0 : i32, i32
  }
  func.func @transform_6(%arg0: i32) -> (i32, i32) {
    %c0_i32 = arith.constant 0 : i32
    %c0_i32_0 = arith.constant 0 : i32
    %c0_i32_1 = arith.constant 0 : i32
    return %c0_i32, %c0_i32_0 : i32, i32
  }
  func.func @transform_7(%arg0: i32) -> (i32, i32) {
    %c0_i32 = arith.constant 0 : i32
    %c0_i32_0 = arith.constant 0 : i32
    return %arg0, %c0_i32 : i32, i32
  }
}

</mosaic_0001>

<bundles_post_ra>
// kernel: tile.29
= control target key start
LH: loop header
LB: loop body
LE: loop exit
PB: predicated region body
PF: predicated region fallthrough
CT: control target
= control target key end

     0   :  { %vm33_vm0 = vcmask 1045508   ;;  %s51_s18 = smov 48  ;;  %s62_s19 = smov 48  ;;  %vm35_vm1 = vcmask 261120   ;;  %vm46_vm2 = vcmask 1048320   ;;  %vm57_vm3 = vcmask 785920   ;;  %s129_s0 = inlined_call_operand.vmem [shape: f32[6,4,32], index: 0, kind: input, shape index: {}]   ;;  %s130_s1 = inlined_call_operand.vmem [shape: f32[6,128], index: 1, kind: output, shape index: {}]  }
   0x1   :  { %v74_v0 = vld [vmem:[%s129_s0 + $0x14] sm:$0xf]  ;;  %v75_v1 = vld [vmem:[%s129_s0 + $0x10] sm:$0xf]  ;;  %v76_v2 = vld [vmem:[%s129_s0 + $0xc] sm:$0xf] }
   0x2   :  { %8 = vst [vmem:[#allocation0 + $0x28] sm:$0xf] %v74_v0  ;;  %13 = vst [vmem:[#allocation0 + $0x20] sm:$0xf] %v75_v1  ;;  %v77_v3 = vld [vmem:[%s129_s0 + $0x8] sm:$0xf] }
   0x3   :  { %18 = vst [vmem:[#allocation0 + $0x18] sm:$0xf] %v76_v2  ;;  %v78_v4 = vld [vmem:[%s129_s0 + $0x4] sm:$0xf]  ;;  %v28_v5 = vld [vmem:[%s129_s0] sm:$0xf] }
   0x4   :  { %23 = vst [vmem:[#allocation0 + $0x10] sm:$0xf] %v77_v3  ;;  %27 = vst [vmem:[#allocation0 + $0x8] sm:$0xf] %v78_v4  ;;  %s40_s0 = smov 48  ;;  %s31_s20 = smov 48 }
   0x5   :  { %29 = vst [vmem:[#allocation0] sm:$0xf] %v28_v5  ;;  %s82_s21 = smov 96   ;;  %s83_s22 = smov 32   ;;  %vm68_vm4 = vcmask 523520  }
   0x6   :  { %s84_s25 = smov 64  }
   0xc   :  { %v38_v6 = vld [vmem:[#allocation0 + $0x3] ss:$8 sm:$0xf]   ;;  %v49_v9 = vld [vmem:[#allocation0 + $0x2] ss:$8 sm:$0xf]  }
   0xd   :  { %v41_v7 = vld [vmem:[#allocation0 + $0x3] ss:$8 sm:%s40_s0]   ;;  %v52_v10 = vld [vmem:[#allocation0 + $0x2] ss:$8 sm:%s51_s18]   ;;  %v63_v12 = vld [vmem:[#allocation0 + $0x1] ss:$8 sm:%s62_s19]  }
   0xe   :  { %v43_v8 = vsel %vm33_vm0, %v41_v7, %v38_v6  ;;  %v60_v11 = vld [vmem:[#allocation0 + $0x1] ss:$8 sm:$0xf]   ;;  %v54_v13 = vsel %vm33_vm0, %v52_v10, %v49_v9  ;;  %v30_v15 = vld [vmem:[#allocation0] ss:$8 sm:$0xf]  }
   0xf   :  { %44 = vrot.lane.b32.xlu0 %v43_v8, %s82_s21  ;;  %v65_v14 = vsel %vm33_vm0, %v63_v12, %v60_v11  ;;  %v32_v16 = vld [vmem:[#allocation0] ss:$8 sm:%s31_s20]  }
  0x10   :  { %66 = vrot.lane.b32.xlu1 %v65_v14, %s83_s22  ;;  %v34_v17 = vsel %vm33_vm0, %v32_v16, %v30_v15 }
  0x11   :  { %36 = vst.msk [vmem:[%s130_s1] sm:$0x3f] %vm35_vm1, %v34_v17  }
  0x13   :  { %55 = vrot.lane.b32.xlu0 %v54_v13, %s84_s25 }
  0x81   :  { %v45_v18 = vpop.permute.xlu0 %44  }
  0x82   :  { %47 = vst.msk [vmem:[%s130_s1] sm:$0x3f] %vm46_vm2, %v45_v18   ;;  %v67_v19 = vpop.permute.xlu1 %66  }
  0x85   :  { %v56_v20 = vpop.permute.xlu0 %55  }
  0x86   :  { %58 = vst.msk [vmem:[%s130_s1] sm:$0x3f] %vm57_vm3, %v56_v20  }
  0x87   :  { %69 = vst.msk [vmem:[%s130_s1] sm:$0x3f] %vm68_vm4, %v67_v19  }

// kernel: _embedding_forward_impl.1
= control target key start
LH: loop header
LB: loop body
LE: loop exit
PB: predicated region body
PF: predicated region fallthrough
CT: control target
= control target key end

     0   :  { %v351_v0 = vmov 0   ;;  %v352_v2 = vmov 2   ;;  %v353_v3 = vmov 1   ;;  %v354_v4 = vmov 3   ;;  %s523_s0 = inlined_call_operand.vmem [shape: f32[8,12], index: 0, kind: input, shape index: {}]   ;;  %s524_s1 = inlined_call_operand.vmem [shape: f32[1,128], index: 1, kind: input, shape index: {}]   ;;  %s525_s4 = inlined_call_operand.vmem [shape: f32[1,128], index: 4, kind: input, shape index: {}]   ;;  %s526_s5 = inlined_call_operand.vmem [shape: f32[1,128], index: 5, kind: input, shape index: {}]   ;;  %s527_s2 = inlined_call_operand.vmem [shape: f32[1,128], index: 2, kind: input, shape index: {}]   ;;  %s528_s3 = inlined_call_operand.vmem [shape: f32[1,128], index: 3, kind: input, shape index: {}]   ;;  %s529_s6 = inlined_call_operand.vmem [shape: f32[6,128], index: 6, kind: input, shape index: {}]   ;;  %s530_s7 = inlined_call_operand.vmem [shape: f32[8,128], index: 7, kind: output, shape index: {}]  }
   0x1   :  { %333 = vset.pattern.permute.xlu0 %v351_v0  ;;  %v27_v1 = vld [vmem:[%s523_s0] sm:$0xff]  ;;  %335 = vset.pattern.permute.xlu1 %v352_v2  ;;  %v355_v5 = vmov 4   ;;  %v356_v6 = vmov 5   ;;  %v357_v7 = vmov 6   ;;  %v358_v8 = vmov 8  }
   0x2   :  { %37 = vperm.xlu0 %333, %v27_v1   ;;  %61 = vperm.xlu1 %335, %v27_v1   ;;  %v359_v9 = vmov 7   ;;  %v360_v10 = vmov 11   ;;  %v361_v11 = vmov 9   ;;  %v362_v12 = vmov 10   ;;  %v26_v14 = vld [vmem:[%s524_s1] sm:$0x1] }
   0x3   :  { %v30_v13 = vlaneseq  ;;  %vm28_vm0 = vcmp.eq.f32.partialorder %v26_v14, 0.0  ;;  %vm41_vm1 = vcmp.eq.f32.partialorder %v26_v14, 1.0  ;;  %vm53_vm2 = vcmp.eq.f32.partialorder %v26_v14, 2.0  ;;  %v305_v35 = vld [vmem:[%s525_s4] ss:$0 sm:$0xff] }
   0x4   :  { %v29_v17 = vsel %vm28_vm0, 1, %v351_v0  ;;  %vm65_vm3 = vcmp.eq.f32.partialorder %v26_v14, 3.0  ;;  %v42_v18 = vsel %vm41_vm1, 1, %v351_v0  ;;  %v54_v19 = vsel %vm53_vm2, 1, %v351_v0  ;;  %v306_v37 = vld [vmem:[%s526_s5] ss:$0 sm:$0xff] }
   0x5   :  { %v415_v15 = vshrl.u32 %v30_v13, 7  ;;  %v66_v21 = vsel %vm65_vm3, 1, %v351_v0  ;;  %v363_v62 = vmov 683565275   ;;  %v364_v0 = vmov 2475754826  }
   0x6   :  { %334 = vset.pattern.permute.xlu0 %v353_v3  ;;  %336 = vset.pattern.permute.xlu1 %v354_v4  ;;  %v368_v14 = vmov 1326507024  }
   0x7   :  { %49 = vperm.xlu0 %334, %v27_v1   ;;  %73 = vperm.xlu1 %336, %v27_v1   ;;  %v418_v16 = vsub.s32 0, %v415_v15 }
   0x9   :  { %v33_v20 = vrot.slane %v29_v17, %v418_v16  ;;  %v46_v22 = vrot.slane %v42_v18, %v418_v16  ;;  %v58_v25 = vrot.slane %v54_v19, %v418_v16  ;;  %v70_v26 = vrot.slane %v66_v21, %v418_v16 }
   0xb   :  { %337 = vset.pattern.permute.xlu1 %v355_v5  ;;  %338 = vset.pattern.permute.xlu0 %v356_v6  ;;  %vm424_vm4 = vcmp.eq.s32.totalorder %v33_v20, 1  ;;  %vm428_vm5 = vcmp.eq.s32.totalorder %v46_v22, 1  ;;  %vm432_vm6 = vcmp.eq.s32.totalorder %v58_v25, 1  ;;  %vm438_vm7 = vcmp.eq.s32.totalorder %v70_v26, 1 }
   0xc   :  { %78 = vperm.xlu1 %337, %v27_v1   ;;  %83 = vperm.xlu0 %338, %v27_v1   ;;  %v365_v5 = vmov 2131351028  }
  0x10   :  { %339 = vset.pattern.permute.xlu1 %v357_v7  ;;  %341 = vset.pattern.permute.xlu0 %v358_v8  ;;  %v366_v8 = vmov 2102212464  }
  0x11   :  { %88 = vperm.xlu1 %339, %v27_v1   ;;  %236 = vperm.xlu0 %341, %v27_v1  }
  0x15   :  { %340 = vset.pattern.permute.xlu1 %v359_v9  ;;  %344 = vset.pattern.permute.xlu0 %v360_v10 }
  0x16   :  { %93 = vperm.xlu1 %340, %v27_v1   ;;  %251 = vperm.xlu0 %344, %v27_v1  }
  0x1a   :  { %342 = vset.pattern.permute.xlu1 %v361_v11  ;;  %v367_v11 = vmov 920167782  }
  0x1b   :  { %241 = vperm.xlu1 %342, %v27_v1  }
  0x1f   :  { %343 = vset.pattern.permute.xlu1 %v362_v12 }
  0x20   :  { %246 = vperm.xlu1 %343, %v27_v1  }
  0x81   :  { %v38_v23 = vpop.permute.xlu0 %37  ;;  %v62_v24 = vpop.permute.xlu1 %61 }
  0x82   :  { %v40_v30 = vsel %vm424_vm4, %v38_v23, 0.0 }
  0x86   :  { %v50_v31 = vpop.permute.xlu0 %49  ;;  %v74_v33 = vpop.permute.xlu1 %73 }
  0x87   :  { %v52_v34 = vsel %vm428_vm5, %v50_v31, %v40_v30 }
  0x88   :  { %v64_v36 = vsel %vm432_vm6, %v62_v24, %v52_v34 }
  0x89   :  { %v76_v38 = vsel %vm438_vm7, %v74_v33, %v64_v36 }
  0x8a   :  { %v122_v39 = vmul.f32 %v305_v35, %v76_v38 }
  0x8b   :  { %v79_v40 = vpop.permute.xlu1 %78  ;;  %v84_v41 = vpop.permute.xlu0 %83 }
  0x8c   :  { %v454_v42 = vadd.f32 %v306_v37, %v122_v39  ;;  %v81_v43 = vsel %vm424_vm4, %v79_v40, 0.0 }
  0x8d   :  { %v86_v44 = vsel %vm428_vm5, %v84_v41, %v81_v43 }
  0x8e   :  { %v133_v45 = vand.u32 2139095040, %v454_v42  ;;  %v130_v46 = vand.u32 2147483647, %v454_v42  ;;  %vm132_vm15 = vcmp.lt.s32.totalorder %v454_v42, 0 }
  0x90   :  { %v134_v47 = vshrl.u32 %v133_v45, 23  ;;  %v89_v48 = vpop.permute.xlu1 %88  ;;  %v137_v51 = vand.u32 8388607, %v130_v46  ;;  %v237_v58 = vpop.permute.xlu0 %236  ;;  %vm131_vm0 = vcmp.le.f32.partialorder %v130_v46, 0.7853982 }
  0x91   :  { %v91_v49 = vsel %vm432_vm6, %v89_v48, %v86_v44  ;;  %v239_v3 = vsel %vm424_vm4, %v237_v58, 0.0  ;;  %vm222_vm4 = vweird.f32 %v454_v42 }
  0x92   :  { %v307_v50 = vadd.s32 4294967169, %v134_v47  ;;  %v138_v55 = vor.u32 8388608, %v137_v51 }
  0x94   :  { %v140_v52 = vadd.s32 1, %v307_v50  ;;  %v178_v2 = vshll.u32 %v138_v55, 8 }
  0x95   :  { %v94_v53 = vpop.permute.xlu1 %93  ;;  %v252_v25 = vpop.permute.xlu0 %251 }
  0x96   :  { %vm141_vm8 = vcmp.gt.s32.totalorder %v140_v52, 0  ;;  %v468_v54 = vsel %vm438_vm7, %v94_v53, %v91_v49 }
  0x97   :  { %v142_v56 = vsel %vm141_vm8, %v140_v52, 0 }
  0x98   :  { %v144_v57 = vand.u32 31, %v142_v56  ;;  %v143_v59 = vshrl.u32 %v142_v56, 5 }
  0x9a   :  { %v145_v60 = vsub.s32 32, %v144_v57  ;;  %v242_v61 = vpop.permute.xlu1 %241  ;;  %v147_v63 = vshll.u32 %v363_v62, %v144_v57  ;;  %v150_v1 = vshll.u32 %v364_v0, %v144_v57  ;;  %v153_v7 = vshll.u32 %v365_v5, %v144_v57 }
  0x9b   :  { %v156_v10 = vshll.u32 %v366_v8, %v144_v57  ;;  %v159_v13 = vshll.u32 %v367_v11, %v144_v57  ;;  %vm162_vm9 = vcmp.lt.s32.totalorder %v143_v59, 1  ;;  %vm165_vm10 = vcmp.lt.s32.totalorder %v143_v59, 4 }
  0x9c   :  { %v148_v4 = vshrl.u32 %v364_v0, %v145_v60  ;;  %v151_v6 = vshrl.u32 %v365_v5, %v145_v60  ;;  %v154_v9 = vshrl.u32 %v366_v8, %v145_v60  ;;  %v157_v12 = vshrl.u32 %v367_v11, %v145_v60 }
  0x9d   :  { %v160_v17 = vshrl.u32 %v368_v14, %v145_v60  ;;  %v244_v23 = vsel %vm428_vm5, %v242_v61, %v239_v3  ;;  %v146_v26 = vshrl.u32 %v363_v62, %v145_v60  ;;  %vm164_vm11 = vcmp.lt.s32.totalorder %v143_v59, 3 }
  0x9e   :  { %v149_v18 = vor.u32 %v148_v4, %v147_v63  ;;  %v152_v19 = vor.u32 %v151_v6, %v150_v1  ;;  %v155_v20 = vor.u32 %v154_v9, %v153_v7  ;;  %v158_v21 = vor.u32 %v157_v12, %v156_v10  ;;  %v303_v10 = vld [vmem:[%s527_s2] ss:$0 sm:$0xff] }
  0x9f   :  { %v161_v22 = vor.u32 %v160_v17, %v159_v13  ;;  %v247_v24 = vpop.permute.xlu1 %246  ;;  %vm163_vm12 = vcmp.lt.s32.totalorder %v143_v59, 2  ;;  %v107_v14 = vmul.f32 %v303_v10, %v468_v54  ;;  %v255_v54 = vld [vmem:[%s529_s6] sm:$0x3f] }
  0xa0   :  { %v167_v27 = vsel %vm165_vm10, %v155_v20, 2102212464  ;;  %v170_v30 = vsel %vm162_vm9, %v149_v18, %v152_v19  ;;  %v174_v31 = vsel %vm162_vm9, %v152_v19, %v155_v20  ;;  %v171_v33 = vsel %vm165_vm10, %v158_v21, 920167782 }
  0xa1   :  { %v175_v34 = vsel %vm165_vm10, %v161_v22, 1326507024  ;;  %v249_v35 = vsel %vm432_vm6, %v247_v24, %v244_v23  ;;  %v172_v36 = vsel %vm164_vm11, %v155_v20, %v171_v33  ;;  %v166_v38 = vsel %vm162_vm9, %v146_v26, %v149_v18  ;;  %v304_v18 = vld [vmem:[%s528_s3] ss:$0 sm:$0xff] }
  0xa2   :  { %v176_v37 = vsel %vm164_vm11, %v158_v21, %v175_v34  ;;  %v480_v28 = vsel %vm438_vm7, %v252_v25, %v249_v35  ;;  %v168_v39 = vsel %vm164_vm11, %v152_v19, %v167_v27  ;;  %v173_v40 = vsel %vm163_vm12, %v170_v30, %v172_v36 }
  0xa3   :  { %v177_v41 = vsel %vm163_vm12, %v174_v31, %v176_v37  ;;  %v486_v45 = vmul.u32.u64.low %v178_v2, %v173_v40  ;;  %v487_v47 = vmul.u32.u64.high %v178_v2, %v173_v40, %v486_v45  ;;  %v169_v29 = vsel %vm163_vm12, %v166_v38, %v168_v39 }
  0xa4   :  { %v483_v43 = vmul.u32.u64.low %v178_v2, %v177_v41  ;;  %v484_v44 = vmul.u32.u64.high %v178_v2, %v177_v41, %v483_v43  ;;  %v185_v49 = vmul.u32 %v178_v2, %v169_v29  ;;  %v114_v20 = vadd.f32 %v304_v18, %v107_v14 }
  0xa5   :  { %v188_v48 = vadd.s32 1, %v487_v47  ;;  %v266_v26 = vsub.s32 1, %v415_v15  ;;  %v260_v31 = vrot.slane %v255_v54, %v418_v16  ;;  %v273_v33 = vsub.s32 2, %v415_v15 }
  0xa6   :  { %vm187_vm13 = vc.u32 %v484_v44, %v486_v45  ;;  %v186_v61 = vadd.s32 %v486_v45, %v484_v44  ;;  %vm256_vm5 = vcmp.eq.f32.partialorder %v480_v28, 0.0  ;;  %v280_v38 = vsub.s32 3, %v415_v15 }
  0xa7   :  { %v189_v32 = vsel %vm187_vm13, %v188_v48, %v487_v47  ;;  %v267_v37 = vrot.slane %v255_v54, %v266_v26  ;;  %vm263_vm6 = vcmp.eq.f32.partialorder %v480_v28, 1.0  ;;  %v274_v40 = vrot.slane %v255_v54, %v273_v33 }
  0xa8   :  { %v190_v50 = vadd.s32 %v189_v32, %v185_v49  ;;  %v287_v41 = vsub.s32 4, %v415_v15  ;;  %v261_v43 = vsel %vm256_vm5, %v260_v31, 0.0  ;;  %vm270_vm7 = vcmp.eq.f32.partialorder %v480_v28, 2.0 }
  0xa9   :  { %v281_v44 = vrot.slane %v255_v54, %v280_v38  ;;  %v268_v45 = vsel %vm263_vm6, %v267_v37, 0.0  ;;  %vm277_vm8 = vcmp.eq.f32.partialorder %v480_v28, 3.0  ;;  %v275_v48 = vsel %vm270_vm7, %v274_v40, 0.0 }
  0xaa   :  { %v191_v51 = vadd.s32 536870912, %v190_v50  ;;  %v288_v29 = vrot.slane %v255_v54, %v287_v41  ;;  %vm284_vm9 = vcmp.eq.f32.partialorder %v480_v28, 4.0  ;;  %vm291_vm10 = vcmp.eq.f32.partialorder %v480_v28, 5.0 }
  0xac   :  { %v192_v52 = vshrl.u32 %v191_v51, 30 }
  0xae   :  { %v193_v53 = vshll.u32 %v192_v52, 30  ;;  %v216_v9 = vsub.s32 4, %v192_v52 }
  0xb0   :  { %v194_v55 = vsub.s32 %v190_v50, %v193_v53  ;;  %v217_v13 = vsel %vm132_vm15, %v216_v9, %v192_v52  ;;  %v282_v50 = vsel %vm277_vm8, %v281_v44, 0.0  ;;  %v289_v52 = vsel %vm284_vm9, %v288_v29, 0.0 }
  0xb1   :  { %v219_v19 = vsel %vm131_vm0, 0, %v217_v13 }
  0xb2   :  { %v196_v56 = vsub.s32 0, %v194_v55  ;;  %v223_v21 = vadd.s32 3, %v219_v19 }
  0xb4   :  { %v308_v57 = vmin.u32 %v196_v56, %v194_v55  ;;  %v224_v22 = vand.u32 3, %v223_v21 }
  0xb6   :  { %v198_v58 = vclz %v308_v57  ;;  %vm229_vm1 = vcmp.eq.s32.totalorder %v224_v22, 2  ;;  %vm226_vm2 = vcmp.eq.s32.totalorder %v224_v22, 0  ;;  %vm225_vm3 = vcmp.lt.s32.totalorder %v224_v22, 2 }
  0xb8   :  { %v309_v59 = vadd.s32 4294967294, %v198_v58 }
  0xba   :  { %vm310_vm14 = vcmp.lt.s32.totalorder %v309_v59, 0 }
  0xbb   :  { %v201_v60 = vsel %vm310_vm14, 0, %v309_v59 }
  0xbc   :  { %v202_v62 = vsub.s32 32, %v201_v60  ;;  %v206_v63 = vsub.s32 4294967266, %v201_v60  ;;  %v203_v0 = vshll.u32 %v194_v55, %v201_v60 }
  0xbe   :  { %v204_v1 = vshrl.u32 %v186_v61, %v202_v62  ;;  %v207_v2 = vadd.s32 127, %v206_v63 }
  0xc0   :  { %v205_v3 = vor.u32 %v204_v1, %v203_v0  ;;  %v208_v4 = vshll.u32 %v207_v2, 23 }
  0xc2   :  { %v209_v5 = vor.u32 4788187, %v208_v4  ;;  %v212_v7 = vcvt.s32.f32 %v205_v3 }
  0xc4   :  { %v210_v6 = vand.u32 2147483647, %v209_v5 }
  0xc6   :  { %v213_v8 = vmul.f32 %v212_v7, %v210_v6 }
  0xc8   :  { %v214_v11 = vxor.u32 2147483648, %v213_v8 }
  0xca   :  { %v215_v12 = vsel %vm132_vm15, %v214_v11, %v213_v8 }
  0xcb   :  { %v218_v17 = vsel %vm131_vm0, %v454_v42, %v215_v12  ;;  %v294_v42 = vsub.s32 5, %v415_v15 }
  0xcc   :  { %345 = vcosq.f32 %v218_v17 }
  0xcd   :  { %347 = vsinq.f32 %v218_v17  ;;  %v295_v32 = vrot.slane %v255_v54, %v294_v42 }
  0xce   :  { %349 = vtanh.f32 %v114_v20 }
  0xcf   :  { %v296_v55 = vsel %vm291_vm10, %v295_v32, 0.0 }
  0xd6   :  { %v346_v23 = vpop.eup %345 }
  0xd7   :  { %v348_v24 = vpop.eup %347  ;;  %v230_v46 = vxor.u32 2147483648, %v346_v23 }
  0xd8   :  { %v227_v25 = vxor.u32 2147483648, %v348_v24  ;;  %v350_v35 = vpop.eup %349 }
  0xd9   :  { %v231_v27 = vsel %vm229_vm1, %v230_v46, %v348_v24 }
  0xda   :  { %v228_v30 = vsel %vm226_vm2, %v346_v23, %v227_v25 }
  0xdb   :  { %v232_v34 = vsel %vm225_vm3, %v228_v30, %v231_v27 }
  0xdc   :  { %v233_v36 = vsel %vm222_vm4, nan, %v232_v34 }
  0xdd   :  { %v234_v39 = vadd.f32 %v350_v35, %v233_v36 }
  0xdf   :  { %v262_v16 = vadd.f32 %v261_v43, %v234_v39 }
  0xe1   :  { %v269_v47 = vadd.f32 %v268_v45, %v262_v16 }
  0xe3   :  { %v276_v49 = vadd.f32 %v275_v48, %v269_v47 }
  0xe5   :  { %v283_v51 = vadd.f32 %v282_v50, %v276_v49 }
  0xe7   :  { %v290_v53 = vadd.f32 %v289_v52, %v283_v51 }
  0xe9   :  { %v297_v56 = vadd.f32 %v296_v55, %v290_v53 }
  0xeb   :  { %298 = vst [vmem:[%s530_s7] sm:$0xff] %v297_v56 }

</bundles_post_ra>
